<compile_context>
chip_gen: v7x
topology: tpu7x:2x2x1
jax: 0.10.0
libtpu: 0.0.40
codegen_flags: <defaults>
</compile_context>

<pallas_src>
import functools

import jax
import jax.numpy as jnp
from jax import lax
from jax.experimental import pallas as pl
from jax.experimental.pallas import tpu as pltpu

_LANES = 128
_PACKED_BLOCK_BYTES = 2 * 1024 * 1024   # packed kernel keeps several block-sized temporaries live
_ROWS_BLOCK_BYTES = 4 * 1024 * 1024     # simple streaming kernel -> bigger blocks are fine
_MIN_GRID_STEPS = 8                     # keep double-buffering busy / both v7x TensorCores fed
_PALLAS_MIN_BYTES = 1 * 1024 * 1024     # below this the XLA-fused softmax wins on launch overhead


def _round_up(a: int, b: int) -> int:
    return (a + b - 1) // b * b


def _vmem_capacity_bytes() -> int:
    try:
        return int(pltpu.get_tpu_info().vmem_capacity_bytes)
    except Exception:
        return 64 * 1024 * 1024  # v7x per-core size == the smallest across v5e/v6e/v7x


def _compiler_params(block_bytes: int, live_blocks: int) -> pltpu.CompilerParams:
    # 2 (double buffer) x 2 (in + out) pipeline buffers plus `live_blocks` block-sized kernel-body
    # temporaries, plus slack for compiler scratch.  Clamped to stay inside v7x's 64 MiB VMEM.
    needed = (4 + live_blocks) * block_bytes + (8 << 20)
    return pltpu.CompilerParams(
        dimension_semantics=("parallel",),
        vmem_limit_bytes=int(min(max(needed, 16 << 20), 48 << 20)),
    )


def _pick_block_rows(num_rows: int, row_bytes: int, target_bytes: int) -> int:
    """Rows per block: ~target_bytes blocks, capped so the grid has >= _MIN_GRID_STEPS steps."""
    rt = max(8, target_bytes // row_bytes // 8 * 8)
    cap = max(8, _round_up(pl.cdiv(num_rows, _MIN_GRID_STEPS), 8))
    return min(rt, cap)


@functools.cache
def _roll_shift_sign() -> int:
    """One-time probe of pltpu.roll's shift convention.

    Returns +1 if pltpu.roll matches jnp.roll (out[i] = in[i - shift]) and -1 otherwise, so the
    packed kernel's segmented reduction is correct under either rotate direction.
    """
    def probe(x_ref, o_ref):
        o_ref[...] = pltpu.roll(x_ref[...], 1, axis=1)

    x = jnp.tile(lax.iota(jnp.float32, _LANES)[None, :], (8, 1))
    y = pl.pallas_call(probe, out_shape=jax.ShapeDtypeStruct((8, _LANES), jnp.float32))(x)
    v = float(y[0, 1])
    if v == 0.0:
        return 1
    if v == 2.0:
        return -1
    raise RuntimeError(f"unexpected pltpu.roll probe value: {v}")


def _softmax_packed_kernel(x_ref, o_ref, *, seg: int, roll_sign: int):
    """Block (rt, 128); every 128-lane row holds 128 // seg independent softmax rows of width seg."""
    x = x_ref[...]
    lanes = x.shape[-1]
    pos = lax.broadcasted_iota(jnp.int32, (1, lanes), 1) % seg  # lane position within its segment

    # Per-segment max: log2(seg) masked roll-butterfly steps on the XLU.  After the loop every
    # lane holds the max over its own seg-wide segment (a per-segment constant).
    m = x
    s = 1
    while s < seg:
        rolled_in = pltpu.roll(m, (roll_sign * s) % lanes, axis=1)             # from lane i - s
        rolled_wrap = pltpu.roll(m, (roll_sign * (s - seg)) % lanes, axis=1)   # from lane i - s + seg
        m = jnp.maximum(m, jnp.where(pos >= s, rolled_in, rolled_wrap))
        s *= 2

    e = jnp.exp(x - m)

    # Per-segment sum, broadcast back to every lane, via one block-diagonal 0/1 matmul on the MXU.
    # e is split into bf16 hi/lo parts so the reduction keeps ~f32 accuracy on a single-pass bf16
    # MXU matmul (the 0/1 matrix is exact in bf16).
    row = lax.broadcasted_iota(jnp.int32, (lanes, lanes), 0) // seg
    col = lax.broadcasted_iota(jnp.int32, (lanes, lanes), 1) // seg
    seg_ones = (row == col).astype(jnp.bfloat16)
    e_hi = e.astype(jnp.bfloat16)
    e_lo = (e - e_hi.astype(jnp.float32)).astype(jnp.bfloat16)
    denom = (jnp.dot(e_hi, seg_ones, preferred_element_type=jnp.float32) +
             jnp.dot(e_lo, seg_ones, preferred_element_type=jnp.float32))
    o_ref[...] = e / denom


def _softmax_rows_kernel(x_ref, o_ref):
    """Block (rt, W): one full softmax row per sublane row; reduce over the lane axis."""
    x = x_ref[...]
    m = jnp.max(x, axis=-1, keepdims=True)
    e = jnp.exp(x - m)
    o_ref[...] = e / jnp.sum(e, axis=-1, keepdims=True)


@functools.partial(jax.jit, static_argnames=("roll_sign",))
def _softmax_packed(x: jax.Array, roll_sign: int) -> jax.Array:
    n, c, h, w = x.shape
    packed_rows = (n * c * h * w) // _LANES
    xp = x.reshape(packed_rows, _LANES)         # free reshape: same row-major HBM layout
    rt = _pick_block_rows(packed_rows, _LANES * 4, _PACKED_BLOCK_BYTES)
    out = pl.pallas_call(
        functools.partial(_softmax_packed_kernel, seg=w, roll_sign=roll_sign),
        out_shape=jax.ShapeDtypeStruct((packed_rows, _LANES), x.dtype),
        grid_spec=pltpu.PrefetchScalarGridSpec(
            num_scalar_prefetch=0,
            grid=(pl.cdiv(packed_rows, rt),),   # partial trailing block: OOB stores are masked
            in_specs=[pl.BlockSpec((rt, _LANES), lambda i: (i, 0))],
            out_specs=pl.BlockSpec((rt, _LANES), lambda i: (i, 0)),
        ),
        compiler_params=_compiler_params(rt * _LANES * 4, live_blocks=6),
    )(xp)
    return out.reshape(n, c, h, w)


@jax.jit
def _softmax_rows(x: jax.Array) -> jax.Array:
    n, c, h, w = x.shape
    rows = n * c * h
    x2 = x.reshape(rows, w)
    rt = _pick_block_rows(rows, w * 4, _ROWS_BLOCK_BYTES)
    out = pl.pallas_call(
        _softmax_rows_kernel,
        out_shape=jax.ShapeDtypeStruct((rows, w), x.dtype),
        grid_spec=pltpu.PrefetchScalarGridSpec(
            num_scalar_prefetch=0,
            grid=(pl.cdiv(rows, rt),),          # partial trailing block: OOB stores are masked
            in_specs=[pl.BlockSpec((rt, w), lambda i: (i, 0))],
            out_specs=pl.BlockSpec((rt, w), lambda i: (i, 0)),
        ),
        compiler_params=_compiler_params(rt * w * 4, live_blocks=2),
    )(x2)
    return out.reshape(n, c, h, w)


_xla_softmax = jax.jit(lambda x: jax.nn.softmax(x, axis=-1))


def softmax_last_dim(x: jax.Array, *, force_pallas: bool = False) -> jax.Array:
    """torch.nn.Softmax(dim=-1) forward for a rank-4 (N, C, H, W) tensor."""
    assert x.ndim == 4, "expected a rank-4 input (N, C, H, W)"
    n, c, h, w = x.shape
    rows = n * c * h

    if not force_pallas and x.size * x.dtype.itemsize < _PALLAS_MIN_BYTES:
        # Tiny payload: pallas_call launch + DMA setup dominates wall time; let XLA fuse it.
        return _xla_softmax(x)

    # TODO(synk): add an online-softmax path (grid axis over W marked "arbitrary", running max/sum
    # in VMEM scratch) for W so large that a full-row block overflows this chip's VMEM.
    if 4 * 8 * w * x.dtype.itemsize + (8 << 20) > _vmem_capacity_bytes():
        return _xla_softmax(x)

    if w < _LANES and _LANES % w == 0 and rows % (_LANES // w) == 0:
        try:
            return _softmax_packed(x, roll_sign=_roll_shift_sign())
        except Exception:
            # Safety net: if the packed kernel cannot be lowered on this backend, fall back to the
            # (correct, just less lane-dense) rows-layout kernel below.
            return _softmax_rows(x)
    return _softmax_rows(x)


if __name__ == "__main__":
    key = jax.random.PRNGKey(0)
    k1, k2, k3, k4 = jax.random.split(key, 4)

    def _check(x):
        y = jax.block_until_ready(softmax_last_dim(x, force_pallas=True))
        ref = jax.nn.softmax(x, axis=-1)
        assert y.shape == x.shape and y.dtype == x.dtype
        assert jnp.allclose(y, ref, atol=1e-5, rtol=1e-5), float(jnp.max(jnp.abs(y - ref)))
        assert jnp.allclose(jnp.sum(y, axis=-1), 1.0, atol=1e-5)
        return y

    # Nominal module shape: packed small-W path (W=16 -> 8 softmax rows per 128-lane vector row).
    _check(jax.random.normal(k1, (2, 4, 16, 16), dtype=jnp.float32))
    # Packed path with a partial trailing grid block (18 packed rows, 8-row blocks -> grid of 3).
    _check(jax.random.normal(k2, (2, 4, 18, 16), dtype=jnp.float32))
    # Row count that does not pack evenly -> rows-on-sublanes fallback with a partial block.
    _check(jax.random.normal(k3, (2, 3, 10, 16), dtype=jnp.float32))
    # W >= 128 path (full row on the lane axis) with a partial trailing grid block.
    _check(jax.random.normal(k4, (1, 2, 10, 256), dtype=jnp.float32))

    print("KERNEL_OK")
</pallas_src>

<mosaic_0001>
module attributes {stable_mosaic.version = 11 : i64} {
  func.func @probe(%arg0: memref<8x128xf32, #tpu.memory_space<vmem>>, %arg1: memref<8x128xf32, #tpu.memory_space<vmem>>) attributes {dimension_semantics = [], scalar_prefetch = 0 : i64, scratch_operands = 0 : i64, tpu.core_type = #tpu.core_type<tc>} {
    %c0 = arith.constant 0 : index
    %c0_0 = arith.constant 0 : index
    %0 = vector.load %arg0[%c0, %c0_0] : memref<8x128xf32, #tpu.memory_space<vmem>>, vector<8x128xf32>
    %c1_i32 = arith.constant 1 : i32
    %1 = tpu.dynamic_rotate %0 by %c1_i32 dim 1 : vector<8x128xf32>, i32 -> vector<8x128xf32>
    %c0_1 = arith.constant 0 : index
    %c0_2 = arith.constant 0 : index
    %2 = vector.load %arg1[%c0_1, %c0_2] : memref<8x128xf32, #tpu.memory_space<vmem>>, vector<8x128xf32>
    tpu.vector_store %arg1[%c0_1, %c0_2], %1 {strides = array<i32>} : memref<8x128xf32, #tpu.memory_space<vmem>>, vector<8x128xf32>,
    return
  }
}

module attributes {stable_mosaic.version = 11 : i64} {
  func.func @_softmax_rows_kernel(%arg0: i32, %arg1: memref<16x16xf32, #tpu.memory_space<vmem>>, %arg2: memref<16x16xf32, #tpu.memory_space<vmem>>) attributes {dimension_semantics = [#tpu.dimension_semantics<parallel>], iteration_bounds = array<i64: 8>, scalar_prefetch = 0 : i64, scratch_operands = 0 : i64, tpu.core_type = #tpu.core_type<tc>, window_params = [{transform_indices = @transform_0, window_bounds = array<i64: 16, 16>}, {transform_indices = @transform_1, window_bounds = array<i64: 16, 16>}]} {
    %c0 = arith.constant 0 : index
    %c0_0 = arith.constant 0 : index
    %0 = vector.load %arg1[%c0, %c0_0] : memref<16x16xf32, #tpu.memory_space<vmem>>, vector<16x16xf32>
    %cst = arith.constant dense<0xFF800000> : vector<16xf32>
    %1 = vector.multi_reduction <maximumf>, %0, %cst [1] : vector<16x16xf32> to vector<16xf32>
    %2 = vector.shape_cast %1 : vector<16xf32> to vector<16x1xf32>
    %3 = vector.broadcast %2 : vector<16x1xf32> to vector<16x16xf32>
    %4 = arith.subf %0, %3 : vector<16x16xf32>
    %5 = math.exp %4 : vector<16x16xf32>
    %cst_1 = arith.constant dense<0.000000e+00> : vector<16xf32>
    %6 = vector.multi_reduction <add>, %5, %cst_1 [1] : vector<16x16xf32> to vector<16xf32>
    %7 = vector.shape_cast %6 : vector<16xf32> to vector<16x1xf32>
    %8 = vector.broadcast %7 : vector<16x1xf32> to vector<16x16xf32>
    %9 = arith.divf %5, %8 : vector<16x16xf32>
    %c0_2 = arith.constant 0 : index
    %c0_3 = arith.constant 0 : index
    %10 = vector.load %arg2[%c0_2, %c0_3] : memref<16x16xf32, #tpu.memory_space<vmem>>, vector<16x16xf32>
    tpu.vector_store %arg2[%c0_2, %c0_3], %9 {strides = array<i32>} : memref<16x16xf32, #tpu.memory_space<vmem>>, vector<16x16xf32>,
    return
  }
  func.func @transform_0(%arg0: i32) -> (i32, i32) {
    %c0_i32 = arith.constant 0 : i32
    %c0_i32_0 = arith.constant 0 : i32
    return %arg0, %c0_i32 : i32, i32
  }
  func.func @transform_1(%arg0: i32) -> (i32, i32) {
    %c0_i32 = arith.constant 0 : i32
    %c0_i32_0 = arith.constant 0 : i32
    return %arg0, %c0_i32 : i32, i32
  }
}

</mosaic_0001>

<bundles_post_ra>
// kernel: tpu_custom_call.1
= control target key start
LH: loop header
LB: loop body
LE: loop exit
PB: predicated region body
PF: predicated region fallthrough
CT: control target
= control target key end

     0   :  { %6 = vsyncpa [#allocation3], 0  ;;  %s128_s0 = inlined_call_operand.hbm [shape: f32[8,128], index: 0, kind: input, shape index: {}]   ;;  %s129_s1 = inlined_call_operand.hbm [shape: f32[8,128], index: 1, kind: output, shape index: {}]  }
   0x1   :  { %7 = vsyncpa [#allocation4], 0  ;;  %s91_s6 = smov [#allocation2]   ;;  %s43_s10 = scalar_lea.hbm %s128_s0, 128 }
   0x2   :  { %s14_s7 = sshll.u32 %s91_s6, 4  ;;  %p44_p0 = scmp.ne.s32.totalorder %s128_s0, %s43_s10  ;;  %s15_s7 = int_to_ptr.vmem [resolvable:$true] %s14_s7 }
   0x3   :  { %p47_p1 = scmp.lt.u32.totalorder %s43_s10, %s128_s0 }
   0x5   :  { %p49_p2 = pnand %p47_p1, %p44_p0 }
   0x7   :  { %52 = shalt.err (!%p49_p2)
}
   0x8   :  { %s53_s15 = scalar_lea.vmem %s15_s7, 128  ;;  %p58_p4 = scmp.lt.s32.totalorder %s15_s7, %s15_s7 }
   0x9   :  { %p54_p3 = scmp.ne.s32.totalorder %s15_s7, %s53_s15  ;;  %p59_p5 = scmp.lt.s32.totalorder %s53_s15, %s53_s15 }
   0xb   :  { %p60_p6 = por %p59_p5, %p58_p4 }
   0xd   :  { %p61_p7 = pnand %p60_p6, %p54_p3 }
   0xf   :  { %64 = shalt.err (!%p61_p7)
}
  0x10   :  { %17 = dma.hbm_to_vmem [thread:$0]  %s128_s0, 128, %s15_s7, [#allocation3]  }
  0x11   :  { %87 = dma.done.wait [#allocation3], 128  }
  0x12   :  { %88 = vsyncadd [#allocation3], 4294967168  ;;  %v21_v0 = vld [vmem:[#allocation2] sm:$0xff]  ;;  %s92_s18 = smov 1   ;;  %s93_s19 = smov [#allocation5]  }
  0x13   :  { %22 = vrot.lane.b32.xlu0 %v21_v0, %s92_s18  ;;  %s31_s20 = sshll.u32 %s93_s19, 4  ;;  %s32_s20 = int_to_ptr.vmem [resolvable:$true] %s31_s20 }
  0x14   :  { %s65_s21 = scalar_lea.vmem %s32_s20, 128  ;;  %p70_p9 = scmp.lt.s32.totalorder %s32_s20, %s32_s20 }
  0x15   :  { %p66_p8 = scmp.ne.s32.totalorder %s32_s20, %s65_s21  ;;  %p71_p10 = scmp.lt.s32.totalorder %s65_s21, %s65_s21 }
  0x17   :  { %p72_p11 = por %p71_p10, %p70_p9 }
  0x19   :  { %p73_p12 = pnand %p72_p11, %p66_p8 }
  0x85   :  { %v23_v1 = vpop.permute.xlu0 %22 }
  0x86   :  { %24 = vst [vmem:[#allocation5] sm:$0xff] %v23_v1 }
  0x87   :  { %76 = shalt.err (!%p73_p12)
}
  0x88   :  { %s77_s0 = scalar_lea.hbm %s129_s1, 128 }
  0x89   :  { %p78_p13 = scmp.ne.s32.totalorder %s129_s1, %s77_s0  ;;  %p81_p0 = scmp.lt.u32.totalorder %s77_s0, %s129_s1 }
  0x8b   :  { %p83_p1 = pnand %p81_p0, %p78_p13 }
  0x8d   :  { %86 = shalt.err (!%p83_p1)
}
  0x8e   :  { %34 = dma.vmem_to_hbm [thread:$0]  %s32_s20, 128, %s129_s1, [#allocation4]  }
  0x8f   :  { %89 = dma.done.wait [#allocation4], 128  }
  0x90   :  { %90 = vsyncadd [#allocation4], 4294967168 }
  0x91   :  { %38 = vsyncpa [#allocation3], 1 }
  0x92   :  { %39 = vsyncpa [#allocation4], 1 }

// kernel: _softmax_rows.1
= control target key start
LH: loop header
LB: loop body
LE: loop exit
PB: predicated region body
PF: predicated region fallthrough
CT: control target
= control target key end

     0   :  { %6 = vsyncpa [#allocation3], 0  ;;  %s609_s0 = inlined_call_operand.hbm [shape: f32[128,16], index: 0, kind: input, shape index: {}]   ;;  %s610_s1 = inlined_call_operand.hbm [shape: f32[128,16], index: 1, kind: output, shape index: {}]  }
   0x1   :  { %8 = vsyncpa [#allocation3 + $0x1], 0 }
   0x2   :  { %9 = vsyncpa [#allocation4], 0 }
   0x3   :  { %11 = vsyncpa [#allocation4 + $0x1], 0  ;;  %s439_s6 = smov 0   ;;  %s441_s7 = smov 0  }
   0x4   :  { %s443_s8 = smov 0   ;;  %s445_s9 = smov 0  }
   0x5 LB: > { %s460_s10 = sadd.s32 4294967295, %s421_s9   ;;  %s251_s11 = sadd.s32 4294967294, %s421_s9   ;;  %s421_s9 = sphi %s445_s9, %s622_s9   ;;  %s417_s8 = sphi %s443_s8, %s621_s8   ;;  %s413_s7 = sphi %s441_s7, %s620_s7   ;;  %s409_s6 = sphi %s439_s6, %s619_s6  }
   0x6   : > { %s464_s12 = sadd.s32 1, %s421_s9   ;;  %s24_s13 = sadd.s32 1, %s417_s8 }
   0x7   : > { %s21_s14 = ssub.s32 %s421_s9, %s464_s12  ;;  %p31_p0 = scmp.ne.s32.totalorder %s417_s8, %s413_s7 }
   0x8   : > { %p22_p1 = scmp.eq.s32.totalorder %s21_s14, 0  ;;  %p32_p2 = scmp.eq.s32.totalorder %s421_s9, 0 }
   0x9   : > { %p37_p3 = scmp.ne.s32.totalorder %s413_s7, %s409_s6  ;;  %p38_p4 = scmp.eq.s32.totalorder %s460_s10, 0 }
   0xa   : > { %s476_s15 = scalar_select %p22_p1, %s417_s8, %s24_s13  }
   0xb   : > { %p478_p5 = por %p32_p2, %p31_p0  ;;  %p482_p6 = por %p38_p4, %p37_p3 }
   0xc   : > { %p61_p7 = scmp.eq.s32.totalorder %s460_s10, 7  ;;  %p67_p8 = scmp.eq.s32.totalorder %s251_s11, 7 }
   0xd   : > { %p279_p9 = scmp.lt.s32.totalorder %s421_s9, 8  ;;  %s87_s20 = sand.u32 1, %s417_s8  }
   0xe   : > { %p488_p10 = por %p61_p7, %p31_p0  ;;  %p492_p11 = por %p67_p8, %p37_p3 }
   0xf   : > { %s265_s21 = sshll.u32 %s421_s9, 8  ;;  %s254_s22 = sshll.u32 %s87_s20, 4 }
  0x10   : > { %s614_s18 = scalar_select %p488_p10, 1, 0 }
  0x11   : > { %s615_s19 = scalar_select %p492_p11, 1, 0 }
  0x12   : > { %s501_s25 = scalar_lea.hbm %s609_s0, %s265_s21  ;;  %s91_s26 = scalar_lea.vmem [#allocation2], %s254_s22 }
  0x13   : > { %s98_s27 = sshll.u32 %s91_s26, 4  ;;  %p505_p12 = pnand %p279_p9, %p478_p5  ;;  %s509_s27 = int_to_ptr.vmem [resolvable:$true] %s98_s27 }
  0x14   : > { %s511_s29 = scalar_lea.sflag [#allocation3], %s87_s20  ;;  %s325_s30 = scalar_lea.hbm %s501_s25, 256 }
  0x15   : > { %p326_p13 = scmp.ne.s32.totalorder %s501_s25, %s325_s30  ;;  %p327_p0 = pneg %p505_p12 }
  0x16   : > { %s330_s4 = scalar_lea.hbm %s609_s0, 2048  ;;  %p331_p3 = scmp.lt.u32.totalorder %s501_s25, %s609_s0 }
  0x17   : > { %p328_p1 = pnand %p327_p0, %p326_p13  ;;  %p332_p4 = scmp.lt.u32.totalorder %s330_s4, %s325_s30 }
  0x18   : > { %p334_p7 = scmp.lt.u32.totalorder %s325_s30, %s501_s25 }
  0x19   : > { %p329_p2 = pneg %p328_p1  ;;  %p333_p5 = por %p332_p4, %p331_p3 }
  0x1b   : > { %p335_p8 = por %p334_p7, %p333_p5 }
  0x1d   : > { %p336_p9 = pnand %p335_p8, %p329_p2 }
  0x1f   : > { %339 = shalt.err (!%p336_p9)
}
  0x20   : > { %s340_s13 = scalar_lea.vmem %s509_s27, 256  ;;  %s423_s14 = smov [#allocation2]  }
  0x21   : > { %p341_p13 = scmp.ne.s32.totalorder %s509_s27, %s340_s13  ;;  %s345_s16 = sshll.u32 %s423_s14, 4  ;;  %s346_s16 = int_to_ptr.vmem [resolvable:$false] %s345_s16 }
  0x22   : > { %s347_s20 = scalar_lea.vmem %s346_s16, 512  ;;  %p348_p10 = scmp.lt.s32.totalorder %s509_s27, %s346_s16 }
  0x23   : > { %p343_p1 = pnand %p341_p13, %p327_p0  ;;  %p349_p3 = scmp.lt.s32.totalorder %s347_s20, %s340_s13 }
  0x25   : > { %p344_p11 = pneg %p343_p1  ;;  %p350_p4 = por %p349_p3, %p348_p10 }
  0x27   : > { %p351_p5 = pnand %p350_p4, %p344_p11 }
  0x29   : > { %354 = shalt.err (!%p351_p5)
}
  0x2a   : > { %s424_s21 = smov 128   ;;  %s425_s22 = smov 8  }
  0x2b   : > { %274 = dma.hbm_to_vmem [thread:$0]  (!%p505_p12), %s501_s25, 256, %s509_s27, %s511_s29, %s424_s21, %s424_s21, %s425_s22  }
  0x2c   : > { %p257_p0 = scmp.ge.s32.totalorder %s421_s9, 1  ;;  %p106_p2 = scmp.lt.s32.totalorder %s421_s9, 9 }
  0x2e   : > { %p107_p7 = pnand %p257_p0, %p106_p2 }
  0x2f   : > { %s542_s23 = sand.u32 (!%p107_p7), 1, %s413_s7  }
  0x30   : > { %110 = sbr.rel (%p107_p7) target bundleno = 390 (0x186), region = 24  ;;  %s258_s24 = sshll.u32 (!%p107_p7), %s542_s23, 4 }
  0x31   : > { %s113_s26 = scalar_lea.sflag (!%p107_p7), [#allocation3], %s542_s23  ;;  %s116_s30 = scalar_lea.vmem (!%p107_p7), [#allocation2], %s258_s24 }
  0x37   : > { %400 = dma.done.wait (%p482_p6), %s113_s26, 256  }
  0x38   : > { %402 = vsyncadd (%p482_p6), %s113_s26, 4294967040  ;;  %vm139_vm0 = vcmask 130048   ;;  %v137_v0 = vld [vmem:[%s116_s30] sm:$0xff]  ;;  %v138_v1 = vld [vmem:[%s116_s30 + $0x8] sm:$0xff]  ;;  %s266_s17 = sshll.u32 %s460_s10, 8  ;;  %s134_s25 = scalar_lea.vmem [#allocation5], %s258_s24 }
  0x39   : > { %v140_v2 = vsel %vm139_vm0, %v137_v0, -inf  ;;  %v143_v3 = vsel %vm139_vm0, %v138_v1, -inf  ;;  %s178_s27 = sshll.u32 %s134_s25, 4  ;;  %s563_s2 = scalar_lea.hbm %s610_s1, %s266_s17  ;;  %s565_s27 = int_to_ptr.vmem [resolvable:$true] %s178_s27 }
  0x3a   : > { %141 = vmax.xlane.f32.xlu0 %v140_v2  ;;  %s165_s10 = scalar_lea.sflag [#allocation4], %s542_s23  ;;  %s355_s3 = scalar_lea.vmem %s565_s27, 256 }
  0x3b   : > { %p356_p6 = scmp.ne.s32.totalorder %s565_s27, %s355_s3  ;;  %p617_p10 = scmp.ne.s32.totalorder %s614_s18, 0 }
  0x3c   : > { %s426_s4 = smov [#allocation5]  }
  0x3d   : > { %p357_p11 = pnand %p356_p6, %p617_p10  ;;  %s359_s5 = sshll.u32 %s426_s4, 4  ;;  %s360_s5 = int_to_ptr.vmem [resolvable:$false] %s359_s5 }
  0x3e   : > { %144 = vmax.xlane.f32.xlu0 %v143_v3  ;;  %s361_s11 = scalar_lea.vmem %s360_s5, 512  ;;  %p362_p8 = scmp.lt.s32.totalorder %s565_s27, %s360_s5 }
  0x3f   : > { %p358_p12 = pneg %p357_p11  ;;  %p363_p9 = scmp.lt.s32.totalorder %s361_s11, %s355_s3 }
  0x41   : > { %p364_p13 = por %p363_p9, %p362_p8 }
  0x43   : > { %p365_p1 = pnand %p364_p13, %p358_p12 }
  0xc7   : > { %v142_v4 = vpop.xlane.xlu0 %141 }
  0xc8   : > { %v146_v5 = vsub.f32 %v137_v0, %v142_v4 }
  0xca   : > { %v148_v6 = vmul.f32 1.442695, %v146_v5 }
  0xcb   : > { %v145_v7 = vpop.xlane.xlu0 %144 }
  0xcc   : > { %317 = vpow2.f32 %v148_v6  ;;  %v147_v8 = vsub.f32 %v138_v1, %v145_v7 }
  0xce   : > { %v150_v9 = vmul.f32 1.442695, %v147_v8 }
  0xd0   : > { %319 = vpow2.f32 %v150_v9 }
  0xd6   : > { %v318_v10 = vpop.eup %317 }
  0xd7   : > { %v152_v11 = vsel %vm139_vm0, %v318_v10, 0.0 }
  0xd8   : > { %153 = vadd.xlane.f32.xlu1 %v152_v11 }
  0xda   : > { %v320_v12 = vpop.eup %319 }
  0xdb   : > { %v155_v13 = vsel %vm139_vm0, %v320_v12, 0.0 }
  0xdc   : > { %156 = vadd.xlane.f32.xlu1 %v155_v13 }
 0x165   : > { %v154_v14 = vpop.xlane.xlu1 %153 }
 0x166   : > { %321 = vrcp.f32 %v154_v14 }
 0x169   : > { %v157_v15 = vpop.xlane.xlu1 %156 }
 0x16a   : > { %323 = vrcp.f32 %v157_v15 }
 0x170   : > { %v322_v16 = vpop.eup %321 }
 0x171   : > { %v159_v17 = vmul.f32 %v322_v16, %v318_v10 }
 0x173   : > { %162 = vst.msk [vmem:[%s134_s25] sm:$0xff] %vm139_vm0, %v159_v17 }
 0x174   : > { %v324_v18 = vpop.eup %323 }
 0x175   : > { %v161_v19 = vmul.f32 %v324_v18, %v320_v12 }
 0x177   : > { %163 = vst.msk [vmem:[%s134_s25 + $0x8] sm:$0xff] %vm139_vm0, %v161_v19 }
 0x178   : > { %368 = shalt.err (!%p365_p1)
}
 0x179   : > { %s369_s13 = scalar_lea.hbm %s563_s2, 256  ;;  %s373_s20 = scalar_lea.hbm %s610_s1, 2048 }
 0x17a   : > { %p370_p3 = scmp.ne.s32.totalorder %s563_s2, %s369_s13  ;;  %p374_p0 = scmp.lt.u32.totalorder %s563_s2, %s610_s1 }
 0x17b   : > { %p375_p2 = scmp.lt.u32.totalorder %s373_s20, %s369_s13  ;;  %p377_p6 = scmp.lt.u32.totalorder %s369_s13, %s563_s2 }
 0x17c   : > { %p371_p4 = pnand %p370_p3, %p617_p10 }
 0x17d   : > { %p376_p7 = por %p375_p2, %p374_p0 }
 0x17e   : > { %p372_p5 = pneg %p371_p4 }
 0x17f   : > { %p378_p11 = por %p377_p6, %p376_p7 }
 0x181   : > { %p379_p12 = pnand %p378_p11, %p372_p5 }
 0x183   : > { %382 = shalt.err (!%p379_p12)
}
 0x184   : > { %s427_s24 = smov 128   ;;  %s428_s26 = smov 8  }
 0x185   : > { %269 = dma.vmem_to_hbm [thread:$0]  (%p617_p10), %s565_s27, 256, %s563_s2, %s165_s10, %s427_s24, %s427_s24, %s428_s26  }
 0x186 PF: > { %p280_p8 = scmp.ge.s32.totalorder %s421_s9, 2  ;;  %s193_s30 = sand.u32 1, %s409_s6  }
 0x187   : > { %p618_p9 = scmp.ne.s32.totalorder %s615_s19, 0  ;;  %s194_s17 = scalar_lea.sflag [#allocation4], %s193_s30 }
 0x189   : > { %p276_p13 = pnand %p280_p8, %p618_p9 }
 0x18b   : > { %404 = dma.done.wait (!%p276_p13), %s194_s17, 256  }
 0x18c   : > { %406 = vsyncadd (!%p276_p13), %s194_s17, 4294967040  ;;  %p14_p1 = scmp.ge.s32.totalorder %s464_s12, 10   ;;  %s619_s6 = smov %s413_s7 }
 0x18d   : > { %s620_s7 = smov %s417_s8  ;;  %s621_s8 = smov %s476_s15 }
 0x18e   : > { %s622_s9 = smov %s464_s12  ;;  %16 = sbr.rel (!%p14_p1) target bundleno = 5 (0x5), region = 69 }
 0x195   :  { %199 = vsyncpa [#allocation3], 1 }
 0x196   :  { %201 = vsyncpa [#allocation3 + $0x1], 1 }
 0x197   :  { %202 = vsyncpa [#allocation4], 1 }
 0x198   :  { %204 = vsyncpa [#allocation4 + $0x1], 1 }

</bundles_post_ra>
